<compile_context>
chip_gen: v5e
topology: v5e:2x2
jax: 0.10.0
libtpu: 0.0.40
codegen_flags: <defaults>
</compile_context>

<pallas_src>
import jax
import jax.numpy as jnp
from jax import lax
from jax.experimental import pallas as pl
from jax.experimental.pallas import tpu as pltpu


def _triplet_wrt_kernel(xq_ref, xk_ref, sqq_ref, sqk_ref, tq_ref, tk_ref, out_ref):
    xq = xq_ref[...]            # (TM, Dp)   query rows of this tile (input dtype)
    xk = xk_ref[...]            # (N,  Dp)   all keys, resident       (input dtype)
    sq_q = sqq_ref[...]         # (TM, 1)    f32 squared norms of tile rows
    sq_k = sqk_ref[...]         # (1,  N)    f32 squared norms of all rows
    t_q = tq_ref[...]           # (TM, 1)    int32 labels of tile rows
    t_k = tk_ref[...]           # (1,  N)    int32 labels of all rows

    # --- pdist_torch: ||xi||^2 + ||xj||^2 - 2 <xi, xj> ---
    # Contract over D of both operands: no transposed copy is materialized.
    gram = lax.dot_general(
        xq, xk,
        dimension_numbers=(((1,), (1,)), ((), ())),
        preferred_element_type=jnp.float32)                      # (TM, N) on MXU

    dist2 = sq_q + sq_k - 2.0 * gram
    dist = jnp.sqrt(jnp.maximum(dist2, 1e-12))                   # (TM, N)

    is_pos = t_q == t_k                                          # (TM, N) bool

    # --- positive branch: softmax over dist * is_pos (faithful to torch) ---
    d_ap = jnp.where(is_pos, dist, 0.0)                          # dist_ap
    max_p = jnp.max(d_ap, axis=1, keepdims=True)                 # includes masked 0s
    e_p = jnp.where(is_pos, jnp.exp(dist - max_p), 0.0)          # exp once per tile
    z_p = jnp.sum(e_p, axis=1, keepdims=True) + 1e-6
    furthest_positive = jnp.sum(d_ap * e_p, axis=1, keepdims=True) / z_p   # (TM,1)

    # --- negative branch: softmax over -dist * is_neg ---
    d_an = jnp.where(is_pos, 0.0, dist)                          # dist_an
    max_n = jnp.max(jnp.where(is_pos, 0.0, -dist), axis=1, keepdims=True)
    e_n = jnp.where(is_pos, 0.0, jnp.exp(-dist - max_n))         # exp once per tile
    z_n = jnp.sum(e_n, axis=1, keepdims=True) + 1e-6
    closest_negative = jnp.sum(d_an * e_n, axis=1, keepdims=True) / z_n    # (TM,1)

    # --- SoftMarginLoss(cn - fp, y=1) per row, numerically stable softplus ---
    margin = closest_negative - furthest_positive                # (TM, 1)
    out_ref[...] = (jnp.maximum(-margin, 0.0)
                    + jnp.log1p(jnp.exp(-jnp.abs(margin))))


def _pick_tile_m(n, max_tile=256):
    """Largest multiple-of-8 tile <= max_tile that divides n (256 is safe on
    v5e/v6e/v7x VMEM budgets for the live (TILE_M, N) temporaries)."""
    if n % 8 != 0:
        return n                      # single full block (block == full dims is legal)
    t = min(max_tile, n)
    while n % t != 0:
        t -= 8
    return t


def triplet_loss_wrt(inputs, targets):
    """inputs: (N, D) float embeddings (f32 or bf16); targets: (N,) int labels."""
    N, D = inputs.shape

    # Lane-dense feature dim: zero-pad D up to a multiple of 128 (no effect on
    # the Gram matrix or squared norms).
    Dp = ((D + 127) // 128) * 128
    x = inputs if Dp == D else jnp.pad(inputs, ((0, 0), (0, Dp - D)))

    # Layout plumbing done in the wrapper (fused by XLA): squared norms and
    # labels as both (N,1) and (1,N) so the kernel never transposes.
    sq = jnp.sum(jnp.square(inputs.astype(jnp.float32)), axis=1, keepdims=True)  # (N,1)
    sq_row = sq.reshape(1, N)
    t_col = targets.reshape(N, 1).astype(jnp.int32)
    t_row = targets.reshape(1, N).astype(jnp.int32)

    tile_m = _pick_tile_m(N)
    num_tiles = N // tile_m
    itemsize = jnp.dtype(x.dtype).itemsize

    per_row = pl.pallas_call(
        _triplet_wrt_kernel,
        out_shape=jax.ShapeDtypeStruct((N, 1), jnp.float32),
        grid=(num_tiles,),
        in_specs=[
            pl.BlockSpec((tile_m, Dp), lambda i: (i, 0)),   # query tile (pipelined)
            pl.BlockSpec((N, Dp), lambda i: (0, 0)),        # keys, resident
            pl.BlockSpec((tile_m, 1), lambda i: (i, 0)),    # sq norms (rows of tile)
            pl.BlockSpec((1, N), lambda i: (0, 0)),         # sq norms (all cols)
            pl.BlockSpec((tile_m, 1), lambda i: (i, 0)),    # labels (rows of tile)
            pl.BlockSpec((1, N), lambda i: (0, 0)),         # labels (all cols)
        ],
        out_specs=pl.BlockSpec((tile_m, 1), lambda i: (i, 0)),
        compiler_params=pltpu.CompilerParams(
            dimension_semantics=("parallel",)),             # megacore-shardable rows
        cost_estimate=pl.CostEstimate(
            flops=2 * N * N * Dp,
            transcendentals=2 * N * N + N,
            bytes_accessed=2 * N * Dp * itemsize + 4 * N * 4 + N * 4),
    )(x, x, sq, sq_row, t_col, t_row)

    # O(N) final reduction (SoftMarginLoss mean) -- negligible, kept in XLA so
    # the grid axis can stay "parallel".
    return jnp.mean(per_row)


def triplet_loss_wrt_ref(inputs, targets):
    """Pure-JAX reference mirroring the PyTorch module, for validation."""
    x = inputs.astype(jnp.float32)
    sq = jnp.sum(x * x, axis=1, keepdims=True)
    dist = jnp.sqrt(jnp.maximum(sq + sq.T - 2.0 * (x @ x.T), 1e-12))
    t = targets.reshape(1, -1)
    is_pos = (t == t.T).astype(jnp.float32)
    is_neg = 1.0 - is_pos
    dist_ap, dist_an = dist * is_pos, dist * is_neg

    def sw(d, m):
        mv = jnp.max(d * m, axis=1, keepdims=True)
        diff = d - mv
        z = jnp.sum(jnp.exp(diff) * m, axis=1, keepdims=True) + 1e-6
        return jnp.exp(diff) * m / z

    fp = jnp.sum(dist_ap * sw(dist_ap, is_pos), axis=1)
    cn = jnp.sum(dist_an * sw(-dist_an, is_neg), axis=1)
    return jnp.mean(jnp.log1p(jnp.exp(-(cn - fp))))


if __name__ == "__main__":
    key = jax.random.PRNGKey(0)
    N, D = 8, 32                                   # small batch of embeddings
    inputs = jax.random.normal(key, (N, D), dtype=jnp.float32)
    targets = jnp.array([0, 0, 1, 1, 2, 2, 3, 3], dtype=jnp.int32)

    loss = triplet_loss_wrt(inputs, targets)
    jax.block_until_ready(loss)

    ref = triplet_loss_wrt_ref(inputs, targets)
    assert jnp.allclose(loss, ref, rtol=1e-4, atol=1e-5), (loss, ref)
    print("KERNEL_OK")
</pallas_src>

<mosaic_0001>
module attributes {stable_mosaic.version = 11 : i64} {
  func.func @_triplet_wrt_kernel(%arg0: i32, %arg1: memref<8x128xf32, #tpu.memory_space<vmem>>, %arg2: memref<8x128xf32, #tpu.memory_space<vmem>>, %arg3: memref<8x1xf32, #tpu.memory_space<vmem>>, %arg4: memref<1x8xf32, #tpu.memory_space<vmem>>, %arg5: memref<8x1xi32, #tpu.memory_space<vmem>>, %arg6: memref<1x8xi32, #tpu.memory_space<vmem>>, %arg7: memref<8x1xf32, #tpu.memory_space<vmem>>) attributes {dimension_semantics = [#tpu.dimension_semantics<parallel>], iteration_bounds = array<i64: 1>, scalar_prefetch = 0 : i64, scratch_operands = 0 : i64, tpu.core_type = #tpu.core_type<tc>, window_params = [{transform_indices = @transform_0, window_bounds = array<i64: 8, 128>}, {pipeline_mode = #tpu.pipeline_mode<synchronous>, transform_indices = @transform_1, window_bounds = array<i64: 8, 128>}, {transform_indices = @transform_2, window_bounds = array<i64: 8, 1>}, {pipeline_mode = #tpu.pipeline_mode<synchronous>, transform_indices = @transform_3, window_bounds = array<i64: 1, 8>}, {transform_indices = @transform_4, window_bounds = array<i64: 8, 1>}, {pipeline_mode = #tpu.pipeline_mode<synchronous>, transform_indices = @transform_5, window_bounds = array<i64: 1, 8>}, {transform_indices = @transform_6, window_bounds = array<i64: 8, 1>}]} {
    %c0 = arith.constant 0 : index
    %c0_0 = arith.constant 0 : index
    %0 = vector.load %arg1[%c0, %c0_0] : memref<8x128xf32, #tpu.memory_space<vmem>>, vector<8x128xf32>
    %c0_1 = arith.constant 0 : index
    %c0_2 = arith.constant 0 : index
    %1 = vector.load %arg2[%c0_1, %c0_2] : memref<8x128xf32, #tpu.memory_space<vmem>>, vector<8x128xf32>
    %c0_3 = arith.constant 0 : index
    %c0_4 = arith.constant 0 : index
    %2 = vector.load %arg3[%c0_3, %c0_4] : memref<8x1xf32, #tpu.memory_space<vmem>>, vector<8x1xf32>
    %c0_5 = arith.constant 0 : index
    %c0_6 = arith.constant 0 : index
    %3 = vector.load %arg4[%c0_5, %c0_6] : memref<1x8xf32, #tpu.memory_space<vmem>>, vector<1x8xf32>
    %c0_7 = arith.constant 0 : index
    %c0_8 = arith.constant 0 : index
    %4 = vector.load %arg5[%c0_7, %c0_8] : memref<8x1xi32, #tpu.memory_space<vmem>>, vector<8x1xi32>
    %c0_9 = arith.constant 0 : index
    %c0_10 = arith.constant 0 : index
    %5 = vector.load %arg6[%c0_9, %c0_10] : memref<1x8xi32, #tpu.memory_space<vmem>>, vector<1x8xi32>
    %cst = arith.constant dense<0.000000e+00> : vector<8x8xf32>
    %6 = tpu.matmul %0, %1, %cst {dimension_numbers = #tpu.dot_dimension_numbers<[1], [1], [0], [0], [0, 0, 1, 0], [], []>} : vector<8x128xf32>, vector<8x128xf32>, vector<8x8xf32> -> vector<8x8xf32>
    %7 = vector.broadcast %2 : vector<8x1xf32> to vector<8x8xf32>
    %8 = vector.broadcast %3 : vector<1x8xf32> to vector<8x8xf32>
    %9 = arith.addf %7, %8 : vector<8x8xf32>
    %cst_11 = arith.constant 2.000000e+00 : f32
    %10 = vector.broadcast %cst_11 : f32 to vector<8x8xf32>
    %11 = arith.mulf %10, %6 : vector<8x8xf32>
    %12 = arith.subf %9, %11 : vector<8x8xf32>
    %cst_12 = arith.constant 9.99999996E-13 : f32
    %13 = vector.broadcast %cst_12 : f32 to vector<8x8xf32>
    %14 = arith.maximumf %12, %13 : vector<8x8xf32>
    %15 = math.sqrt %14 : vector<8x8xf32>
    %16 = vector.broadcast %4 : vector<8x1xi32> to vector<8x8xi32>
    %17 = vector.broadcast %5 : vector<1x8xi32> to vector<8x8xi32>
    %18 = arith.cmpi eq, %16, %17 : vector<8x8xi32>
    %cst_13 = arith.constant 0.000000e+00 : f32
    %19 = vector.broadcast %cst_13 : f32 to vector<8x8xf32>
    %20 = arith.select %18, %15, %19 : vector<8x8xi1>, vector<8x8xf32>
    %cst_14 = arith.constant dense<0xFF800000> : vector<8xf32>
    %21 = vector.multi_reduction <maximumf>, %20, %cst_14 [1] : vector<8x8xf32> to vector<8xf32>
    %22 = vector.shape_cast %21 : vector<8xf32> to vector<8x1xf32>
    %23 = vector.broadcast %22 : vector<8x1xf32> to vector<8x8xf32>
    %24 = arith.subf %15, %23 : vector<8x8xf32>
    %25 = math.exp %24 : vector<8x8xf32>
    %cst_15 = arith.constant 0.000000e+00 : f32
    %26 = vector.broadcast %cst_15 : f32 to vector<8x8xf32>
    %27 = arith.select %18, %25, %26 : vector<8x8xi1>, vector<8x8xf32>
    %cst_16 = arith.constant dense<0.000000e+00> : vector<8xf32>
    %28 = vector.multi_reduction <add>, %27, %cst_16 [1] : vector<8x8xf32> to vector<8xf32>
    %29 = vector.shape_cast %28 : vector<8xf32> to vector<8x1xf32>
    %cst_17 = arith.constant 9.99999997E-7 : f32
    %30 = vector.broadcast %cst_17 : f32 to vector<8x1xf32>
    %31 = arith.addf %29, %30 : vector<8x1xf32>
    %32 = arith.mulf %20, %27 : vector<8x8xf32>
    %cst_18 = arith.constant dense<0.000000e+00> : vector<8xf32>
    %33 = vector.multi_reduction <add>, %32, %cst_18 [1] : vector<8x8xf32> to vector<8xf32>
    %34 = vector.shape_cast %33 : vector<8xf32> to vector<8x1xf32>
    %35 = arith.divf %34, %31 : vector<8x1xf32>
    %cst_19 = arith.constant 0.000000e+00 : f32
    %36 = vector.broadcast %cst_19 : f32 to vector<8x8xf32>
    %37 = arith.select %18, %36, %15 : vector<8x8xi1>, vector<8x8xf32>
    %cst_20 = arith.constant 0.000000e+00 : f32
    %38 = vector.broadcast %cst_20 : f32 to vector<8x8xf32>
    %39 = arith.subf %38, %15 : vector<8x8xf32>
    %cst_21 = arith.constant 0.000000e+00 : f32
    %40 = vector.broadcast %cst_21 : f32 to vector<8x8xf32>
    %41 = arith.select %18, %40, %39 : vector<8x8xi1>, vector<8x8xf32>
    %cst_22 = arith.constant dense<0xFF800000> : vector<8xf32>
    %42 = vector.multi_reduction <maximumf>, %41, %cst_22 [1] : vector<8x8xf32> to vector<8xf32>
    %43 = vector.shape_cast %42 : vector<8xf32> to vector<8x1xf32>
    %cst_23 = arith.constant 0.000000e+00 : f32
    %44 = vector.broadcast %cst_23 : f32 to vector<8x8xf32>
    %45 = arith.subf %44, %15 : vector<8x8xf32>
    %46 = vector.broadcast %43 : vector<8x1xf32> to vector<8x8xf32>
    %47 = arith.subf %45, %46 : vector<8x8xf32>
    %48 = math.exp %47 : vector<8x8xf32>
    %cst_24 = arith.constant 0.000000e+00 : f32
    %49 = vector.broadcast %cst_24 : f32 to vector<8x8xf32>
    %50 = arith.select %18, %49, %48 : vector<8x8xi1>, vector<8x8xf32>
    %cst_25 = arith.constant dense<0.000000e+00> : vector<8xf32>
    %51 = vector.multi_reduction <add>, %50, %cst_25 [1] : vector<8x8xf32> to vector<8xf32>
    %52 = vector.shape_cast %51 : vector<8xf32> to vector<8x1xf32>
    %cst_26 = arith.constant 9.99999997E-7 : f32
    %53 = vector.broadcast %cst_26 : f32 to vector<8x1xf32>
    %54 = arith.addf %52, %53 : vector<8x1xf32>
    %55 = arith.mulf %37, %50 : vector<8x8xf32>
    %cst_27 = arith.constant dense<0.000000e+00> : vector<8xf32>
    %56 = vector.multi_reduction <add>, %55, %cst_27 [1] : vector<8x8xf32> to vector<8xf32>
    %57 = vector.shape_cast %56 : vector<8xf32> to vector<8x1xf32>
    %58 = arith.divf %57, %54 : vector<8x1xf32>
    %59 = arith.subf %58, %35 : vector<8x1xf32>
    %cst_28 = arith.constant 0.000000e+00 : f32
    %60 = vector.broadcast %cst_28 : f32 to vector<8x1xf32>
    %61 = arith.subf %60, %59 : vector<8x1xf32>
    %cst_29 = arith.constant 0.000000e+00 : f32
    %62 = vector.broadcast %cst_29 : f32 to vector<8x1xf32>
    %63 = arith.maximumf %61, %62 : vector<8x1xf32>
    %64 = math.absf %59 : vector<8x1xf32>
    %cst_30 = arith.constant 0.000000e+00 : f32
    %65 = vector.broadcast %cst_30 : f32 to vector<8x1xf32>
    %66 = arith.subf %65, %64 : vector<8x1xf32>
    %67 = math.exp %66 : vector<8x1xf32>
    %68 = math.log1p %67 : vector<8x1xf32>
    %69 = arith.addf %63, %68 : vector<8x1xf32>
    %c0_31 = arith.constant 0 : index
    %c0_32 = arith.constant 0 : index
    %70 = vector.load %arg7[%c0_31, %c0_32] : memref<8x1xf32, #tpu.memory_space<vmem>>, vector<8x1xf32>
    tpu.vector_store %arg7[%c0_31, %c0_32], %69 {strides = array<i32>} : memref<8x1xf32, #tpu.memory_space<vmem>>, vector<8x1xf32>,
    return
  }
  func.func @transform_0(%arg0: i32) -> (i32, i32) {
    %c0_i32 = arith.constant 0 : i32
    %c0_i32_0 = arith.constant 0 : i32
    return %arg0, %c0_i32 : i32, i32
  }
  func.func @transform_1(%arg0: i32) -> (i32, i32) {
    %c0_i32 = arith.constant 0 : i32
    %c0_i32_0 = arith.constant 0 : i32
    %c0_i32_1 = arith.constant 0 : i32
    return %c0_i32, %c0_i32_0 : i32, i32
  }
  func.func @transform_2(%arg0: i32) -> (i32, i32) {
    %c0_i32 = arith.constant 0 : i32
    %c0_i32_0 = arith.constant 0 : i32
    return %arg0, %c0_i32 : i32, i32
  }
  func.func @transform_3(%arg0: i32) -> (i32, i32) {
    %c0_i32 = arith.constant 0 : i32
    %c0_i32_0 = arith.constant 0 : i32
    %c0_i32_1 = arith.constant 0 : i32
    return %c0_i32, %c0_i32_0 : i32, i32
  }
  func.func @transform_4(%arg0: i32) -> (i32, i32) {
    %c0_i32 = arith.constant 0 : i32
    %c0_i32_0 = arith.constant 0 : i32
    return %arg0, %c0_i32 : i32, i32
  }
  func.func @transform_5(%arg0: i32) -> (i32, i32) {
    %c0_i32 = arith.constant 0 : i32
    %c0_i32_0 = arith.constant 0 : i32
    %c0_i32_1 = arith.constant 0 : i32
    return %c0_i32, %c0_i32_0 : i32, i32
  }
  func.func @transform_6(%arg0: i32) -> (i32, i32) {
    %c0_i32 = arith.constant 0 : i32
    %c0_i32_0 = arith.constant 0 : i32
    return %arg0, %c0_i32 : i32, i32
  }
}

</mosaic_0001>

<bundles_post_ra>
// kernel: tpu_custom_call.1
= control target key start
LH: loop header
LB: loop body
LE: loop exit
PB: predicated region body
PF: predicated region fallthrough
CT: control target
= control target key end

     0   :  { %v184_v1 = vmov 0   ;;  %vm79_vm2 = vcmask 64512   ;;  %vm160_vm13 = vcmask 7168   ;;  %s261_s1 = inlined_call_operand.vmem [shape: f32[8,128], index: 1, kind: input, shape index: {}]   ;;  %s262_s0 = inlined_call_operand.vmem [shape: f32[8,128], index: 0, kind: input, shape index: {}]   ;;  %s263_s2 = inlined_call_operand.vmem [shape: f32[8,1], index: 2, kind: input, shape index: {}]   ;;  %s264_s3 = inlined_call_operand.vmem [shape: f32[1,8], index: 3, kind: input, shape index: {}]   ;;  %s265_s5 = inlined_call_operand.vmem [shape: s32[1,8], index: 5, kind: input, shape index: {}]   ;;  %s266_s4 = inlined_call_operand.vmem [shape: s32[8,1], index: 4, kind: input, shape index: {}]   ;;  %s267_s6 = inlined_call_operand.vmem [shape: f32[8,1], index: 6, kind: output, shape index: {}]  }
   0x1   :  { %v24_v0 = vld [vmem:[%s261_s1] sm:$0xff]  ;;  %167 = vset.pattern.permute.xlu0 %v184_v1 }
   0x2   :  { %v25_v2 = vld [vmem:[%s263_s2] sm:$0xff]  ;;  %44 = vmatpush.xpose.msra.mxu0 %v24_v0 }
   0x3   :  { %v23_v3 = vld [vmem:[%s262_s0] sm:$0xff]  ;;  %51 = vperm.xlu0 %167, %v25_v2  }
   0x4   :  { %v27_v4 = vld [vmem:[%s266_s4] sm:$0xff] }
   0x5   :  { %45 = vmatmul.f32.vlgmr.msra.gmra.mxu0 %v23_v3  ;;  %v168_v5 = vld [vmem:[%s264_s3] ss:$0 sm:$0xff] }
   0x6   :  { %v169_v18 = vld [vmem:[%s265_s5] ss:$0 sm:$0xff] }
   0xb   :  { %74 = vperm.xlu0 %167, %v27_v4  }
  0x75   :  { %v52_v6 = vpop.permute.xlu0 %51 }
  0x76   :  { %v57_v7 = vadd.f32 %v168_v5, %v52_v6 }
  0x7d   :  { %v75_v19 = vpop.permute.xlu0 %74 }
  0x7e   :  { %vm238_vm3 = vcmp.eq.s32.totalorder %v75_v19, %v169_v18 }
  0x82   :  { %v46_v8 = vpop.f32.mrf.mxu0 }
  0x83   :  { %v58_v9 = vmul.f32 2.0, %v46_v8 }
  0x85   :  { %v59_v10 = vsub.f32 %v57_v7, %v58_v9 }
  0x87   :  { %v60_v11 = vmax.f32 %v59_v10, 1e-12 }
  0x89   :  { %170 = vrsqrt.f32 %v60_v11  ;;  %vm68_vm0 = vcmp.eq.f32.partialorder %v60_v11, inf  ;;  %v71_v21 = vand.u32 2147483648, %v60_v11  ;;  %vm70_vm1 = vcmp.eq.f32.partialorder %v60_v11, 0.0 }
  0x8f   :  { %v171_v12 = vpop.eup %170 }
  0x90   :  { %v62_v13 = vmul.f32 %v171_v12, %v60_v11 }
  0x92   :  { %v63_v14 = vmul.f32 %v171_v12, %v62_v13 }
  0x94   :  { %v64_v15 = vmul.f32 0.5, %v63_v14 }
  0x96   :  { %v65_v16 = vsub.f32 1.5, %v64_v15 }
  0x98   :  { %v66_v17 = vmul.f32 %v171_v12, %v65_v16 }
  0x9a   :  { %v67_v20 = vmul.f32 %v66_v17, %v60_v11 }
  0x9c   :  { %v69_v22 = vsel %vm68_vm0, %v60_v11, %v67_v20 }
  0x9d   :  { %v72_v24 = vsel %vm70_vm1, %v71_v21, %v69_v22 }
  0x9e   :  { %v78_v25 = vsel %vm238_vm3, %v72_v24, 0.0  ;;  %v111_v27 = vsub.f32 0.0, %v72_v24  ;;  %v110_v43 = vsel %vm238_vm3, 0.0, %v72_v24 }
  0x9f   :  { %v80_v26 = vsel %vm79_vm2, %v78_v25, -inf }
  0xa0   :  { %81 = vmax.xlane.f32.xlu1 %v80_v26  ;;  %v112_v28 = vsel %vm238_vm3, 0.0, %v111_v27 }
  0xa1   :  { %v113_v29 = vsel %vm79_vm2, %v112_v28, -inf }
  0xa8   :  { %114 = vmax.xlane.f32.xlu1 %v113_v29 }
 0x113   :  { %v82_v30 = vpop.xlane.xlu1 %81 }
 0x114   :  { %v83_v31 = vsub.f32 %v72_v24, %v82_v30 }
 0x116   :  { %v84_v32 = vmul.f32 1.442695, %v83_v31 }
 0x118   :  { %172 = vpow2.f32 %v84_v32 }
 0x11b   :  { %v115_v33 = vpop.xlane.xlu1 %114 }
 0x11c   :  { %v116_v34 = vsub.f32 %v111_v27, %v115_v33 }
 0x11e   :  { %v173_v35 = vpop.eup %172  ;;  %v117_v36 = vmul.f32 1.442695, %v116_v34 }
 0x11f   :  { %v86_v37 = vsel %vm238_vm3, %v173_v35, 0.0 }
 0x120   :  { %174 = vpow2.f32 %v117_v36  ;;  %v87_v38 = vsel %vm79_vm2, %v86_v37, 0.0  ;;  %v91_v39 = vmul.f32 %v86_v37, %v78_v25 }
 0x121   :  { %88 = vadd.xlane.f32.xlu2 %v87_v38 }
 0x122   :  { %v92_v40 = vsel %vm79_vm2, %v91_v39, 0.0 }
 0x123   :  { %93 = vadd.xlane.f32.xlu0 %v92_v40 }
 0x126   :  { %v175_v41 = vpop.eup %174 }
 0x127   :  { %v119_v42 = vsel %vm238_vm3, 0.0, %v175_v41 }
 0x128   :  { %v120_v44 = vsel %vm79_vm2, %v119_v42, 0.0  ;;  %v124_v45 = vmul.f32 %v119_v42, %v110_v43 }
 0x129   :  { %121 = vadd.xlane.f32.xlu2 %v120_v44 }
 0x12a   :  { %v125_v46 = vsel %vm79_vm2, %v124_v45, 0.0 }
 0x12b   :  { %126 = vadd.xlane.f32.xlu1 %v125_v46 }
 0x194   :  { %v89_v47 = vpop.xlane.xlu2 %88 }
 0x195   :  { %v90_v48 = vadd.f32 1e-06, %v89_v47 }
 0x196   :  { %v94_v6 = vpop.xlane.xlu0 %93 }
 0x197   :  { %176 = vrcp.f32 %v90_v48  ;;  %v106_v58 = vand.u32 2147483648, %v90_v48  ;;  %vm100_vm5 = vweird.f32 %v90_v48  ;;  %v104_v59 = vand.u32 2147483647, %v90_v48 }
 0x199   :  { %v107_v1 = vor.u32 1.1754944e-38, %v106_v58  ;;  %vm105_vm8 = vcmp.eq.f32.partialorder %v104_v59, 8.507059e+37 }
 0x19c   :  { %v122_v49 = vpop.xlane.xlu2 %121 }
 0x19d   :  { %v177_v50 = vpop.eup %176  ;;  %v123_v51 = vadd.f32 1e-06, %v122_v49 }
 0x19e   :  { %v96_v52 = vmul.f32 %v177_v50, %v90_v48  ;;  %vm101_vm4 = vweird.f32 %v177_v50  ;;  %v127_v7 = vpop.xlane.xlu1 %126 }
 0x19f   :  { %178 = vrcp.f32 %v123_v51  ;;  %vm102_vm6 = vmor %vm100_vm5, %vm101_vm4  ;;  %v139_v61 = vand.u32 2147483648, %v123_v51  ;;  %v137_v0 = vand.u32 2147483647, %v123_v51  ;;  %vm133_vm9 = vweird.f32 %v123_v51 }
 0x1a0   :  { %v97_v53 = vsub.f32 1.0, %v96_v52 }
 0x1a1   :  { %v140_v4 = vor.u32 1.1754944e-38, %v139_v61  ;;  %vm138_vm11 = vcmp.eq.f32.partialorder %v137_v0, 8.507059e+37 }
 0x1a2   :  { %v98_v54 = vmul.f32 %v177_v50, %v97_v53 }
 0x1a4   :  { %v99_v56 = vadd.f32 %v177_v50, %v98_v54 }
 0x1a5   :  { %v179_v55 = vpop.eup %178 }
 0x1a6   :  { %v129_v57 = vmul.f32 %v179_v55, %v123_v51  ;;  %v103_v62 = vsel %vm102_vm6, %v177_v50, %v99_v56  ;;  %vm134_vm7 = vweird.f32 %v179_v55 }
 0x1a7   :  { %v108_v3 = vsel %vm105_vm8, %v107_v1, %v103_v62  ;;  %vm135_vm10 = vmor %vm133_vm9, %vm134_vm7 }
 0x1a8   :  { %v130_v60 = vsub.f32 1.0, %v129_v57  ;;  %v109_v9 = vmul.f32 %v108_v3, %v94_v6 }
 0x1aa   :  { %v131_v63 = vmul.f32 %v179_v55, %v130_v60 }
 0x1ac   :  { %v132_v2 = vadd.f32 %v179_v55, %v131_v63 }
 0x1ae   :  { %v136_v5 = vsel %vm135_vm10, %v179_v55, %v132_v2 }
 0x1af   :  { %v141_v8 = vsel %vm138_vm11, %v140_v4, %v136_v5 }
 0x1b0   :  { %v142_v10 = vmul.f32 %v141_v8, %v127_v7 }
 0x1b2   :  { %v143_v11 = vsub.f32 %v142_v10, %v109_v9 }
 0x1b4   :  { %v146_v12 = vand.u32 2147483647, %v143_v11  ;;  %v144_v19 = vsub.f32 0.0, %v143_v11 }
 0x1b6   :  { %v147_v13 = vsub.f32 0.0, %v146_v12  ;;  %v145_v24 = vmax.f32 %v144_v19, 0.0 }
 0x1b8   :  { %v148_v14 = vmul.f32 1.442695, %v147_v13 }
 0x1ba   :  { %180 = vpow2.f32 %v148_v14 }
 0x1c0   :  { %v181_v15 = vpop.eup %180 }
 0x1c1   :  { %v150_v16 = vadd.f32 1.0, %v181_v15  ;;  %v153_v17 = vmul.f32 -0.5, %v181_v15  ;;  %v156_v20 = vand.u32 2147483647, %v181_v15 }
 0x1c3   :  { %182 = vlog2.f32 %v150_v16  ;;  %v154_v18 = vadd.f32 1.0, %v153_v17  ;;  %vm157_vm12 = vcmp.lt.f32.partialorder %v156_v20, 0.0004427343 }
 0x1c5   :  { %v155_v23 = vmul.f32 %v181_v15, %v154_v18 }
 0x1c9   :  { %v183_v21 = vpop.eup %182 }
 0x1ca   :  { %v152_v22 = vmul.f32 0.6931472, %v183_v21 }
 0x1cc   :  { %v158_v25 = vsel %vm157_vm12, %v155_v23, %v152_v22 }
 0x1cd   :  { %v159_v26 = vadd.f32 %v158_v25, %v145_v24 }
 0x1cf   :  { %161 = vst.msk [vmem:[%s267_s6] sm:$0xff] %vm160_vm13, %v159_v26 }

</bundles_post_ra>
